<compile_context>
chip_gen: v5e
topology: v5e:2x2
jax: 0.10.0
libtpu: 0.0.40
codegen_flags: <defaults>
</compile_context>

<pallas_src>
import functools

import jax
import jax.numpy as jnp
from jax import lax
from jax.experimental import pallas as pl
from jax.experimental.pallas import tpu as pltpu


def shallownet_kernel(x_ref, w1_ref, b1_ref, w2_ref, o_ref, acc_ref):
    j = pl.program_id(0)

    @pl.when(j == 0)
    def _():
        acc_ref[...] = jnp.zeros_like(acc_ref)

    # layer1 slab: (B, tile_h) = X @ W1_tile^T, contracting the last dim of
    # both operands -- no transpose materialized, MXU-fed directly.
    h = lax.dot_general(
        x_ref[...], w1_ref[...],
        dimension_numbers=(((1,), (1,)), ((), ())),
        preferred_element_type=jnp.float32)
    h = jnp.maximum(h + b1_ref[...], jnp.float32(0.0))

    # layer2 partial: N=1 output column -> skip the MXU, use VPU multiply +
    # lane reduction (XLU), accumulating into the resident scratch.
    acc_ref[...] += jnp.sum(h * w2_ref[...], axis=-1, keepdims=True)

    @pl.when(j == pl.num_programs(0) - 1)
    def _():
        o_ref[...] = acc_ref[...]


@functools.partial(jax.jit, static_argnames=("tile_h", "compute_dtype"))
def shallownet_forward(x_nchw, w1, b1, w2, b2, *, tile_h=128,
                       compute_dtype=jnp.float32):
    """x_nchw: (B, C, H, W); w1: (hidden, in); b1: (hidden,);
    w2: (1, hidden); b2: (1,). Returns (B, 1) float32."""
    B = x_nchw.shape[0]
    x = x_nchw.reshape(B, -1)                       # flatten(start_dim=1)
    in_features = x.shape[1]
    hidden = w1.shape[0]

    # --- padding (all pads are zeros, mathematically inert) ---------------
    in_pad = (-in_features) % 128                   # unmasked lanes / DMA
    hid_pad = (-hidden) % tile_h                    # makes any hidden tile-able
    in_p = in_features + in_pad
    hid_p = hidden + hid_pad

    x = x.astype(compute_dtype)
    w1c = w1.astype(compute_dtype)
    if in_pad:
        x = jnp.pad(x, ((0, 0), (0, in_pad)))
        w1c = jnp.pad(w1c, ((0, 0), (0, in_pad)))
    if hid_pad:
        w1c = jnp.pad(w1c, ((0, hid_pad), (0, 0)))

    b1_2d = b1.astype(jnp.float32).reshape(1, hidden)
    w2_2d = w2.astype(jnp.float32).reshape(1, hidden)
    if hid_pad:
        b1_2d = jnp.pad(b1_2d, ((0, 0), (0, hid_pad)))
        w2_2d = jnp.pad(w2_2d, ((0, 0), (0, hid_pad)))

    grid = (hid_p // tile_h,)

    # --- explicit VMEM budget: double-buffered W1 tile dominates ----------
    itemsize = jnp.dtype(compute_dtype).itemsize
    w1_tile_bytes = tile_h * in_p * itemsize
    x_bytes = B * in_p * itemsize
    vmem_limit = 2 * w1_tile_bytes + 2 * x_bytes + (8 << 20)   # + slack
    vmem_limit = int(min(max(vmem_limit, 32 << 20), 96 << 20))

    out = pl.pallas_call(
        shallownet_kernel,
        out_shape=jax.ShapeDtypeStruct((B, 1), jnp.float32),
        grid_spec=pltpu.PrefetchScalarGridSpec(
            num_scalar_prefetch=0,
            grid=grid,
            in_specs=[
                # X: full (B, in_p) block, resident across the grid
                pl.BlockSpec((B, in_p), lambda j: (0, 0)),
                # W1 tile: (tile_h, in_p), streamed along hidden
                pl.BlockSpec((tile_h, in_p), lambda j: (j, 0)),
                # b1 tile: (1, tile_h)
                pl.BlockSpec((1, tile_h), lambda j: (0, j)),
                # W2 tile: (1, tile_h)
                pl.BlockSpec((1, tile_h), lambda j: (0, j)),
            ],
            out_specs=pl.BlockSpec((B, 1), lambda j: (0, 0)),
            scratch_shapes=[pltpu.VMEM((B, 1), jnp.float32)],
        ),
        compiler_params=pltpu.CompilerParams(
            dimension_semantics=("arbitrary",),
            vmem_limit_bytes=vmem_limit),
    )(x, w1c, b1_2d, w2_2d)

    # layer-2 bias applied once outside the kernel.
    # TODO(synk): for v7x, add a parallel batch (or split-hidden) grid axis
    # so both TensorCores are used; with B=2 test shapes it is a no-op.
    return out + b2.astype(jnp.float32).reshape(1, 1)


def reference_forward(x_nchw, w1, b1, w2, b2):
    x = x_nchw.reshape(x_nchw.shape[0], -1).astype(jnp.float32)
    h = jnp.maximum(x @ w1.T + b1, 0.0)
    return h @ w2.T + b2


if __name__ == "__main__":
    # Small shapes consistent with the module's forward:
    # original: in_features = 100*100*3, hidden = 50*50*3
    # here:     in_features = 16*16*3 = 768, hidden = 256
    B, C, H, W = 2, 3, 16, 16
    in_features = C * H * W
    hidden_features = 256

    key = jax.random.PRNGKey(0)
    k_x, k_w1, k_b1, k_w2, k_b2 = jax.random.split(key, 5)

    x = jax.random.normal(k_x, (B, C, H, W), dtype=jnp.float32)
    w1 = jax.random.normal(k_w1, (hidden_features, in_features),
                           dtype=jnp.float32) * 0.02
    b1 = jax.random.normal(k_b1, (hidden_features,), dtype=jnp.float32) * 0.02
    w2 = jax.random.normal(k_w2, (1, hidden_features), dtype=jnp.float32) * 0.02
    b2 = jax.random.normal(k_b2, (1,), dtype=jnp.float32) * 0.02

    out = shallownet_forward(x, w1, b1, w2, b2)
    out = jax.block_until_ready(out)
    ref = reference_forward(x, w1, b1, w2, b2)
    assert out.shape == (B, 1)
    assert jnp.allclose(out, ref, atol=1e-4, rtol=1e-4), (out, ref)

    # Second check: non-aligned in_features / hidden to exercise the padding
    # path (mirrors the real model's hidden=7500 not dividing by 128).
    C2, H2, W2 = 3, 10, 10               # in = 300 -> padded to 384
    hidden2 = 200                        # -> padded to 256
    in2 = C2 * H2 * W2
    x2 = jax.random.normal(k_x, (B, C2, H2, W2), dtype=jnp.float32)
    w1b = jax.random.normal(k_w1, (hidden2, in2), dtype=jnp.float32) * 0.02
    b1b = jax.random.normal(k_b1, (hidden2,), dtype=jnp.float32) * 0.02
    w2b = jax.random.normal(k_w2, (1, hidden2), dtype=jnp.float32) * 0.02
    out2 = jax.block_until_ready(shallownet_forward(x2, w1b, b1b, w2b, b2))
    ref2 = reference_forward(x2, w1b, b1b, w2b, b2)
    assert jnp.allclose(out2, ref2, atol=1e-4, rtol=1e-4), (out2, ref2)

    print("KERNEL_OK")
</pallas_src>

<mosaic_0001>
module attributes {stable_mosaic.version = 11 : i64} {
  func.func @shallownet_kernel(%arg0: i32, %arg1: memref<2x768xf32, #tpu.memory_space<vmem>>, %arg2: memref<128x768xf32, #tpu.memory_space<vmem>>, %arg3: memref<1x128xf32, #tpu.memory_space<vmem>>, %arg4: memref<1x128xf32, #tpu.memory_space<vmem>>, %arg5: memref<2x1xf32, #tpu.memory_space<vmem>>, %arg6: memref<2x1xf32, #tpu.memory_space<vmem>>) attributes {dimension_semantics = [#tpu.dimension_semantics<arbitrary>], iteration_bounds = array<i64: 2>, scalar_prefetch = 0 : i64, scratch_operands = 1 : i64, tpu.core_type = #tpu.core_type<tc>, window_params = [{pipeline_mode = #tpu.pipeline_mode<synchronous>, transform_indices = @transform_0, window_bounds = array<i64: 2, 768>}, {transform_indices = @transform_1, window_bounds = array<i64: 128, 768>}, {transform_indices = @transform_2, window_bounds = array<i64: 1, 128>}, {transform_indices = @transform_3, window_bounds = array<i64: 1, 128>}, {pipeline_mode = #tpu.pipeline_mode<synchronous>, transform_indices = @transform_4, window_bounds = array<i64: 2, 1>}]} {
    %c0_i32 = arith.constant 0 : i32
    %0 = arith.cmpi eq, %arg0, %c0_i32 : i32
    %1 = arith.extui %0 : i1 to i32
    %c0_i32_0 = arith.constant 0 : i32
    %2 = arith.cmpi ne, %1, %c0_i32_0 : i32
    scf.if %2 {
      %cst_15 = arith.constant 0.000000e+00 : f32
      %22 = vector.broadcast %cst_15 : f32 to vector<2x1xf32>
      %c0_16 = arith.constant 0 : index
      %c0_17 = arith.constant 0 : index
      %23 = vector.load %arg6[%c0_16, %c0_17] : memref<2x1xf32, #tpu.memory_space<vmem>>, vector<2x1xf32>
      tpu.vector_store %arg6[%c0_16, %c0_17], %22 {strides = array<i32>} : memref<2x1xf32, #tpu.memory_space<vmem>>, vector<2x1xf32>,
    } else {
    }
    %c0 = arith.constant 0 : index
    %c0_1 = arith.constant 0 : index
    %3 = vector.load %arg1[%c0, %c0_1] : memref<2x768xf32, #tpu.memory_space<vmem>>, vector<2x768xf32>
    %c0_2 = arith.constant 0 : index
    %c0_3 = arith.constant 0 : index
    %4 = vector.load %arg2[%c0_2, %c0_3] : memref<128x768xf32, #tpu.memory_space<vmem>>, vector<128x768xf32>
    %cst = arith.constant dense<0.000000e+00> : vector<2x128xf32>
    %5 = tpu.matmul %3, %4, %cst {dimension_numbers = #tpu.dot_dimension_numbers<[1], [1], [0], [0], [0, 0, 1, 0], [], []>} : vector<2x768xf32>, vector<128x768xf32>, vector<2x128xf32> -> vector<2x128xf32>
    %c0_4 = arith.constant 0 : index
    %c0_5 = arith.constant 0 : index
    %6 = vector.load %arg3[%c0_4, %c0_5] : memref<1x128xf32, #tpu.memory_space<vmem>>, vector<1x128xf32>
    %7 = vector.broadcast %6 : vector<1x128xf32> to vector<2x128xf32>
    %8 = arith.addf %5, %7 : vector<2x128xf32>
    %cst_6 = arith.constant 0.000000e+00 : f32
    %9 = vector.broadcast %cst_6 : f32 to vector<2x128xf32>
    %10 = arith.maximumf %8, %9 : vector<2x128xf32>
    %c0_7 = arith.constant 0 : index
    %c0_8 = arith.constant 0 : index
    %11 = vector.load %arg6[%c0_7, %c0_8] : memref<2x1xf32, #tpu.memory_space<vmem>>, vector<2x1xf32>
    %c0_9 = arith.constant 0 : index
    %c0_10 = arith.constant 0 : index
    %12 = vector.load %arg4[%c0_9, %c0_10] : memref<1x128xf32, #tpu.memory_space<vmem>>, vector<1x128xf32>
    %13 = vector.broadcast %12 : vector<1x128xf32> to vector<2x128xf32>
    %14 = arith.mulf %10, %13 : vector<2x128xf32>
    %cst_11 = arith.constant dense<0.000000e+00> : vector<2xf32>
    %15 = vector.multi_reduction <add>, %14, %cst_11 [1] : vector<2x128xf32> to vector<2xf32>
    %16 = vector.shape_cast %15 : vector<2xf32> to vector<2x1xf32>
    %17 = arith.addf %11, %16 : vector<2x1xf32>
    %c0_12 = arith.constant 0 : index
    %c0_13 = arith.constant 0 : index
    %18 = vector.load %arg6[%c0_12, %c0_13] : memref<2x1xf32, #tpu.memory_space<vmem>>, vector<2x1xf32>
    tpu.vector_store %arg6[%c0_12, %c0_13], %17 {strides = array<i32>} : memref<2x1xf32, #tpu.memory_space<vmem>>, vector<2x1xf32>,
    %c1_i32 = arith.constant 1 : i32
    %19 = arith.cmpi eq, %arg0, %c1_i32 : i32
    %20 = arith.extui %19 : i1 to i32
    %c0_i32_14 = arith.constant 0 : i32
    %21 = arith.cmpi ne, %20, %c0_i32_14 : i32
    scf.if %21 {
      %c0_15 = arith.constant 0 : index
      %c0_16 = arith.constant 0 : index
      %22 = vector.load %arg6[%c0_15, %c0_16] : memref<2x1xf32, #tpu.memory_space<vmem>>, vector<2x1xf32>
      %c0_17 = arith.constant 0 : index
      %c0_18 = arith.constant 0 : index
      %23 = vector.load %arg5[%c0_17, %c0_18] : memref<2x1xf32, #tpu.memory_space<vmem>>, vector<2x1xf32>
      tpu.vector_store %arg5[%c0_17, %c0_18], %22 {strides = array<i32>} : memref<2x1xf32, #tpu.memory_space<vmem>>, vector<2x1xf32>,
    } else {
    }
    return
  }
  func.func @transform_0(%arg0: i32) -> (i32, i32) {
    %c0_i32 = arith.constant 0 : i32
    %c0_i32_0 = arith.constant 0 : i32
    %c0_i32_1 = arith.constant 0 : i32
    return %c0_i32, %c0_i32_0 : i32, i32
  }
  func.func @transform_1(%arg0: i32) -> (i32, i32) {
    %c0_i32 = arith.constant 0 : i32
    %c0_i32_0 = arith.constant 0 : i32
    return %arg0, %c0_i32 : i32, i32
  }
  func.func @transform_2(%arg0: i32) -> (i32, i32) {
    %c0_i32 = arith.constant 0 : i32
    %c0_i32_0 = arith.constant 0 : i32
    return %c0_i32, %arg0 : i32, i32
  }
  func.func @transform_3(%arg0: i32) -> (i32, i32) {
    %c0_i32 = arith.constant 0 : i32
    %c0_i32_0 = arith.constant 0 : i32
    return %c0_i32, %arg0 : i32, i32
  }
  func.func @transform_4(%arg0: i32) -> (i32, i32) {
    %c0_i32 = arith.constant 0 : i32
    %c0_i32_0 = arith.constant 0 : i32
    %c0_i32_1 = arith.constant 0 : i32
    return %c0_i32, %c0_i32_0 : i32, i32
  }
}

</mosaic_0001>

<bundles_post_ra>
// kernel: shallownet_forward.1
= control target key start
LH: loop header
LB: loop body
LE: loop exit
PB: predicated region body
PF: predicated region fallthrough
CT: control target
= control target key end

     0   :  { %9 = vsyncpa [#allocation4], 0  ;;  %s921_s0 = inlined_call_operand.vmem [shape: f32[2,768], index: 0, kind: input, shape index: {}]   ;;  %s922_s1 = inlined_call_operand.hbm [shape: f32[256,768], index: 1, kind: input, shape index: {}]   ;;  %s923_s2 = inlined_call_operand.vmem [shape: f32[1,256], index: 2, kind: input, shape index: {}]   ;;  %s924_s3 = inlined_call_operand.vmem [shape: f32[1,256], index: 3, kind: input, shape index: {}]   ;;  %s925_s4 = inlined_call_operand.vmem [shape: f32[2,1], index: 4, kind: output, shape index: {}]  }
   0x1   :  { %11 = vsyncpa [#allocation4 + $0x1], 0  ;;  %s709_s15 = smov 0   ;;  %s711_s16 = smov 0  }
   0x2   :  { %s713_s17 = smov 0   ;;  %s715_s18 = smov 0  }
   0x3 LB: > { %s728_s19 = sadd.s32 4294967295, %s679_s18   ;;  %s731_s20 = sadd.s32 1, %s679_s18   ;;  %s679_s18 = sphi %s715_s18, %s931_s18   ;;  %s675_s17 = sphi %s713_s17, %s930_s17   ;;  %s671_s16 = sphi %s711_s16, %s929_s16   ;;  %s667_s15 = sphi %s709_s15, %s928_s15  }
   0x4   : > { %s42_s21 = ssub.s32 %s679_s18, %s731_s20  ;;  %s45_s22 = sadd.s32 1, %s675_s17 }
   0x5   : > { %p43_p0 = scmp.eq.s32.totalorder %s42_s21, 0  ;;  %p52_p1 = scmp.ne.s32.totalorder %s675_s17, %s671_s16 }
   0x6   : > { %p53_p2 = scmp.eq.s32.totalorder %s679_s18, 0  ;;  %p58_p3 = scmp.ne.s32.totalorder %s671_s16, %s667_s15 }
   0x7   : > { %s741_s23 = scalar_select %p43_p0, %s675_s17, %s45_s22  }
   0x8   : > { %p54_p4 = por %p53_p2, %p52_p1  ;;  %p59_p5 = scmp.eq.s32.totalorder %s728_s19, 0 }
   0x9   : > { %p577_p6 = scmp.lt.s32.totalorder %s679_s18, 2  ;;  %s158_s25 = sand.u32 1, %s675_s17  }
   0xa   : > { %p745_p7 = por %p59_p5, %p58_p3  ;;  %s568_s26 = smul.u32 768, %s158_s25 }
   0xb   : > { %s569_s27 = smul.u32 768, %s679_s18  ;;  %p751_p8 = pnand %p577_p6, %p54_p4 }
   0xc   : > { %s162_s6 = scalar_lea.vmem [#allocation3], %s568_s26  ;;  %p563_p9 = scmp.ge.s32.totalorder %s679_s18, 1 }
   0xd   : > { %s168_s5 = scalar_lea.hbm %s922_s1, %s569_s27  ;;  %s171_s7 = sshll.u32 %s162_s6, 4  ;;  %s172_s7 = int_to_ptr.vmem [resolvable:$true] %s171_s7 }
   0xe   : > { %s169_s8 = sshll.u32 %s168_s5, 4  ;;  %s159_s9 = scalar_lea.sflag [#allocation4], %s158_s25  ;;  %s170_s8 = int_to_ptr.hbm [resolvable:$true] %s169_s8 }
   0xf   : > { %s615_s10 = sshra.s32 %s170_s8, 4  ;;  %p619_p11 = pneg %p751_p8  ;;  %s616_s10 = int_to_ptr.hbm [resolvable:$true] %s615_s10 }
  0x10   : > { %s617_s11 = scalar_lea.hbm %s616_s10, 768  ;;  %s622_s14 = scalar_lea.hbm %s922_s1, 1536 }
  0x11   : > { %p618_p10 = scmp.ne.s32.totalorder %s616_s10, %s617_s11  ;;  %p623_p0 = scmp.lt.s32.totalorder %s616_s10, %s922_s1 }
  0x12   : > { %p624_p1 = scmp.lt.s32.totalorder %s622_s14, %s617_s11 }
  0x13   : > { %p620_p12 = pnand %p619_p11, %p618_p10 }
  0x14   : > { %p625_p2 = por %p624_p1, %p623_p0 }
  0x15   : > { %p621_p13 = pneg %p620_p12 }
  0x17   : > { %p626_p3 = pnand %p625_p2, %p621_p13 }
  0x19   : > { %629 = shalt.err (!%p626_p3)
}
  0x1a   : > { %s681_s22 = smov 768   ;;  %s682_s25 = smov 48  }
  0x1b   : > { %576 = dma.hbm_to_vmem [thread:$0]  (!%p751_p8), %s170_s8, 12288, %s172_s7, %s159_s9, %s681_s22, %s681_s22, %s682_s25  }
  0x1c   : > { %p191_p4 = scmp.lt.s32.totalorder %s679_s18, 3 }
  0x1e   : > { %p192_p5 = pnand %p563_p9, %p191_p4 }
  0x1f   : > { %s197_s26 = sand.u32 (!%p192_p5), 1, %s671_s16  }
  0x20   : > { %195 = sbr.rel (%p192_p5) target bundleno = 438 (0x1b6), region = 36  ;;  %s198_s29 = scalar_lea.sflag (!%p192_p5), [#allocation4], %s197_s26 }
  0x21   : > { %s570_s27 = smul.u32 (!%p192_p5), 768, %s197_s26 }
  0x23   : > { %s773_s30 = scalar_lea.vmem (!%p192_p5), [#allocation3], %s570_s27 }
  0x25   : > { %662 = dma.done.wait (%p745_p7), %s198_s29, 12288  }
  0x26   : > { %664 = vsyncadd (%p745_p7), %s198_s29, 4294955008  ;;  %p229_p6 = scmp.lt.s32.totalorder %s728_s19, 1  ;;  %p564_p8 = scmp.ne.s32.totalorder %s728_s19, 0 }
  0x28   : > { %s781_s28 = scalar_select %p229_p6, %s728_s19, 1 }
  0x29   : > { %238 = sbr.rel (%p564_p8) target bundleno = 48 (0x30), region = 44 }
  0x2a   : > { %s231_s6 = scalar_lea.vmem %s923_s2, %s781_s28  ;;  %s234_s9 = scalar_lea.vmem %s924_s3, %s781_s28 }
  0x2e   : > { %vm239_vm0 = vcmask 1024   ;;  %v683_v0 = vmov 0.0  }
  0x2f   : > { %240 = vst.msk [vmem:[#allocation2] sm:$0x3] %vm239_vm0, %v683_v0 }
  0x30 PF: > { %v333_v1 = vld [vmem:[%s773_s30 + $0x2d0] sm:$0xff]  ;;  %v334_v2 = vld [vmem:[%s773_s30 + $0x2d8] sm:$0xff]  ;;  %v327_v3 = vld [vmem:[%s773_s30 + $0x2a0] sm:$0xff]  ;;  %vm487_vm1 = vcmask 1041408   ;;  %vm492_vm2 = vcmask 1024   ;;  %p565_p7 = scmp.ne.s32.totalorder %s728_s19, 1 }
  0x31   : > { %360 = vmatpush.xpose.msra.mxu0 %v333_v1  ;;  %380 = vmatpush.xpose.msra.mxu1 %v334_v2  ;;  %v328_v4 = vld [vmem:[%s773_s30 + $0x2a8] sm:$0xff]  ;;  %v321_v5 = vld [vmem:[%s773_s30 + $0x270] sm:$0xff]  ;;  %v322_v6 = vld [vmem:[%s773_s30 + $0x278] sm:$0xff] }
  0x32   : > { %v315_v7 = vld [vmem:[%s773_s30 + $0x240] sm:$0xff]  ;;  %v316_v8 = vld [vmem:[%s773_s30 + $0x248] sm:$0xff]  ;;  %v309_v9 = vld [vmem:[%s773_s30 + $0x210] sm:$0xff] }
  0x33   : > { %v310_v10 = vld [vmem:[%s773_s30 + $0x218] sm:$0xff]  ;;  %v335_v11 = vld [vmem:[%s773_s30 + $0x2e0] sm:$0xff]  ;;  %v304_v13 = vld [vmem:[%s773_s30 + $0x1e8] sm:$0xff] }
  0x34   : > { %v303_v12 = vld [vmem:[%s773_s30 + $0x1e0] sm:$0xff]  ;;  %400 = vmatpush.xpose.msra.mxu2 %v335_v11  ;;  %v336_v14 = vld [vmem:[%s773_s30 + $0x2e8] sm:$0xff]  ;;  %v329_v15 = vld [vmem:[%s773_s30 + $0x2b0] sm:$0xff] }
  0x35   : > { %361 = vmatpush.xpose.msra.mxu0 %v327_v3  ;;  %381 = vmatpush.xpose.msra.mxu1 %v328_v4  ;;  %v297_v16 = vld [vmem:[%s773_s30 + $0x1b0] sm:$0xff]  ;;  %v298_v17 = vld [vmem:[%s773_s30 + $0x1b8] sm:$0xff]  ;;  %v323_v19 = vld [vmem:[%s773_s30 + $0x280] sm:$0xff] }
  0x36   : > { %420 = vmatpush.xpose.msra.mxu3 %v336_v14  ;;  %v330_v18 = vld [vmem:[%s773_s30 + $0x2b8] sm:$0xff]  ;;  %v291_v20 = vld [vmem:[%s773_s30 + $0x180] sm:$0xff]  ;;  %v292_v21 = vld [vmem:[%s773_s30 + $0x188] sm:$0xff] }
  0x37   : > { %v324_v22 = vld [vmem:[%s773_s30 + $0x288] sm:$0xff]  ;;  %v285_v23 = vld [vmem:[%s773_s30 + $0x150] sm:$0xff]  ;;  %v286_v24 = vld [vmem:[%s773_s30 + $0x158] sm:$0xff] }
  0x38   : > { %401 = vmatpush.xpose.msra.mxu2 %v329_v15  ;;  %v317_v25 = vld [vmem:[%s773_s30 + $0x250] sm:$0xff]  ;;  %v318_v26 = vld [vmem:[%s773_s30 + $0x258] sm:$0xff]  ;;  %v279_v27 = vld [vmem:[%s773_s30 + $0x120] sm:$0xff] }
  0x39   : > { %362 = vmatpush.xpose.msra.mxu0 %v321_v5  ;;  %382 = vmatpush.xpose.msra.mxu1 %v322_v6  ;;  %v280_v28 = vld [vmem:[%s773_s30 + $0x128] sm:$0xff]  ;;  %v311_v29 = vld [vmem:[%s773_s30 + $0x220] sm:$0xff]  ;;  %v273_v31 = vld [vmem:[%s773_s30 + $0xf0] sm:$0xff] }
  0x3a   : > { %421 = vmatpush.xpose.msra.mxu3 %v330_v18  ;;  %v312_v30 = vld [vmem:[%s773_s30 + $0x228] sm:$0xff]  ;;  %v274_v32 = vld [vmem:[%s773_s30 + $0xf8] sm:$0xff]  ;;  %v305_v33 = vld [vmem:[%s773_s30 + $0x1f0] sm:$0xff] }
  0x3b   : > { %v306_v34 = vld [vmem:[%s773_s30 + $0x1f8] sm:$0xff]  ;;  %v267_v35 = vld [vmem:[%s773_s30 + $0xc0] sm:$0xff]  ;;  %v268_v36 = vld [vmem:[%s773_s30 + $0xc8] sm:$0xff] }
  0x3c   : > { %402 = vmatpush.xpose.msra.mxu2 %v323_v19  ;;  %v299_v37 = vld [vmem:[%s773_s30 + $0x1c0] sm:$0xff]  ;;  %v300_v38 = vld [vmem:[%s773_s30 + $0x1c8] sm:$0xff]  ;;  %v261_v39 = vld [vmem:[%s773_s30 + $0x90] sm:$0xff] }
  0x3d   : > { %363 = vmatpush.xpose.msra.mxu0 %v315_v7  ;;  %383 = vmatpush.xpose.msra.mxu1 %v316_v8  ;;  %v262_v40 = vld [vmem:[%s773_s30 + $0x98] sm:$0xff]  ;;  %v293_v41 = vld [vmem:[%s773_s30 + $0x190] sm:$0xff]  ;;  %v255_v43 = vld [vmem:[%s773_s30 + $0x60] sm:$0xff] }
  0x3e   : > { %422 = vmatpush.xpose.msra.mxu3 %v324_v22  ;;  %v294_v42 = vld [vmem:[%s773_s30 + $0x198] sm:$0xff]  ;;  %v256_v44 = vld [vmem:[%s773_s30 + $0x68] sm:$0xff]  ;;  %v287_v45 = vld [vmem:[%s773_s30 + $0x160] sm:$0xff] }
  0x3f   : > { %v288_v46 = vld [vmem:[%s773_s30 + $0x168] sm:$0xff]  ;;  %v249_v47 = vld [vmem:[%s773_s30 + $0x30] sm:$0xff]  ;;  %v250_v48 = vld [vmem:[%s773_s30 + $0x38] sm:$0xff] }
  0x40   : > { %403 = vmatpush.xpose.msra.mxu2 %v317_v25  ;;  %v281_v49 = vld [vmem:[%s773_s30 + $0x130] sm:$0xff]  ;;  %v282_v50 = vld [vmem:[%s773_s30 + $0x138] sm:$0xff]  ;;  %v243_v51 = vld [vmem:[%s773_s30] sm:$0xff] }
  0x41   : > { %364 = vmatpush.xpose.msra.mxu0 %v309_v9  ;;  %384 = vmatpush.xpose.msra.mxu1 %v310_v10  ;;  %v244_v52 = vld [vmem:[%s773_s30 + $0x8] sm:$0xff]  ;;  %v275_v53 = vld [vmem:[%s773_s30 + $0x100] sm:$0xff]  ;;  %v337_v54 = vld [vmem:[%s773_s30 + $0x2f0] sm:$0xff] }
  0x42   : > { %423 = vmatpush.xpose.msra.mxu3 %v318_v26  ;;  %v338_v55 = vld [vmem:[%s773_s30 + $0x2f8] sm:$0xff]  ;;  %v276_v56 = vld [vmem:[%s773_s30 + $0x108] sm:$0xff]  ;;  %v269_v57 = vld [vmem:[%s773_s30 + $0xd0] sm:$0xff] }
  0x43   : > { %v331_v58 = vld [vmem:[%s773_s30 + $0x2c0] sm:$0xff]  ;;  %v332_v59 = vld [vmem:[%s773_s30 + $0x2c8] sm:$0xff]  ;;  %v270_v60 = vld [vmem:[%s773_s30 + $0xd8] sm:$0xff] }
  0x44   : > { %404 = vmatpush.xpose.msra.mxu2 %v311_v29  ;;  %v263_v61 = vld [vmem:[%s773_s30 + $0xa0] sm:$0xff]  ;;  %v325_v62 = vld [vmem:[%s773_s30 + $0x290] sm:$0xff]  ;;  %v326_v63 = vld [vmem:[%s773_s30 + $0x298] sm:$0xff] }
  0x45   : > { %365 = vmatpush.xpose.msra.mxu0 %v303_v12  ;;  %385 = vmatpush.xpose.msra.mxu1 %v304_v13  ;;  %v264_v0 = vld [vmem:[%s773_s30 + $0xa8] sm:$0xff]  ;;  %v257_v1 = vld [vmem:[%s773_s30 + $0x70] sm:$0xff]  ;;  %v319_v2 = vld [vmem:[%s773_s30 + $0x260] sm:$0xff] }
  0x46   : > { %424 = vmatpush.xpose.msra.mxu3 %v312_v30  ;;  %v320_v3 = vld [vmem:[%s773_s30 + $0x268] sm:$0xff]  ;;  %v258_v4 = vld [vmem:[%s773_s30 + $0x78] sm:$0xff]  ;;  %v251_v5 = vld [vmem:[%s773_s30 + $0x40] sm:$0xff] }
  0x47   : > { %v313_v6 = vld [vmem:[%s773_s30 + $0x230] sm:$0xff]  ;;  %v314_v7 = vld [vmem:[%s773_s30 + $0x238] sm:$0xff]  ;;  %v252_v9 = vld [vmem:[%s773_s30 + $0x48] sm:$0xff] }
  0x48   : > { %405 = vmatpush.xpose.msra.mxu2 %v305_v33  ;;  %v241_v8 = vld [vmem:[%s921_s0] sm:$0xff]  ;;  %v307_v11 = vld [vmem:[%s773_s30 + $0x200] sm:$0xff]  ;;  %v308_v12 = vld [vmem:[%s773_s30 + $0x208] sm:$0xff] }
  0x49   : > { %366 = vmatpush.xpose.msra.mxu0 %v297_v16  ;;  %386 = vmatpush.xpose.msra.mxu1 %v298_v17  ;;  %345 = vst [vmem:[#allocation1] ss:$4 sm:$0xff] %v241_v8  ;;  %v245_v10 = vld [vmem:[%s773_s30 + $0x10] sm:$0xff]  ;;  %v246_v13 = vld [vmem:[%s773_s30 + $0x18] sm:$0xff]  ;;  %v296_v22 = vld [vmem:[%s773_s30 + $0x1a8] sm:$0xff] }
  0x4a   : > { %425 = vmatpush.xpose.msra.mxu3 %v306_v34  ;;  %v301_v14 = vld [vmem:[%s773_s30 + $0x1d0] sm:$0xff]  ;;  %v302_v15 = vld [vmem:[%s773_s30 + $0x1d8] sm:$0xff]  ;;  %v283_v25 = vld [vmem:[%s773_s30 + $0x140] sm:$0xff] }
  0x4b   : > { %v242_v19 = vld [vmem:[%s921_s0 + $0x8] sm:$0xf]  ;;  %v284_v26 = vld [vmem:[%s773_s30 + $0x148] sm:$0xff] }
  0x4c   : > { %406 = vmatpush.xpose.msra.mxu2 %v299_v37  ;;  %347 = vst [vmem:[#allocation1 + $0x20] ss:$4 sm:$0xff] %v242_v19  ;;  %v271_v29 = vld [vmem:[%s773_s30 + $0xe0] sm:$0xff]  ;;  %v272_v30 = vld [vmem:[%s773_s30 + $0xe8] sm:$0xff] }
  0x4d   : > { %367 = vmatpush.xpose.msra.mxu0 %v291_v20  ;;  %387 = vmatpush.xpose.msra.mxu1 %v292_v21  ;;  %v295_v21 = vld [vmem:[%s773_s30 + $0x1a0] sm:$0xff]  ;;  %v260_v34 = vld [vmem:[%s773_s30 + $0x88] sm:$0xff] }
  0x4e   : > { %426 = vmatpush.xpose.msra.mxu3 %v300_v38  ;;  %v259_v33 = vld [vmem:[%s773_s30 + $0x80] sm:$0xff]  ;;  %v248_v38 = vld [vmem:[%s773_s30 + $0x28] sm:$0xff] }
  0x4f   : > { %v247_v37 = vld [vmem:[%s773_s30 + $0x20] sm:$0xff] }
  0x50   : > { %407 = vmatpush.xpose.msra.mxu2 %v293_v41  ;;  %v350_v16 = vld.sshfl [vmem:[#allocation1 + $0x10] sm:$0xff pattern:$0x73625140]  ;;  %v348_v17 = vld.sshfl [vmem:[#allocation1] sm:$0xff pattern:$0x73625140] }
  0x51   : > { %368 = vmatpush.xpose.msra.mxu0 %v285_v23  ;;  %388 = vmatpush.xpose.msra.mxu1 %v286_v24  ;;  %v351_v18 = vld.sshfl [vmem:[#allocation1 + $0x18] sm:$0xff pattern:$0x73625140]  ;;  %v349_v20 = vld.sshfl [vmem:[#allocation1 + $0x8] sm:$0xff pattern:$0x73625140] }
  0x52   : > { %427 = vmatpush.xpose.msra.mxu3 %v294_v42  ;;  %v289_v23 = vld [vmem:[%s773_s30 + $0x170] sm:$0xff]  ;;  %v290_v24 = vld [vmem:[%s773_s30 + $0x178] sm:$0xff] }
  0x53   : > { %v613_v41 = vld [vmem:[%s231_s6] ss:$0 sm:$0xff] }
  0x54   : > { %408 = vmatpush.xpose.msra.mxu2 %v287_v45 }
  0x55   : > { %369 = vmatpush.xpose.msra.mxu0 %v279_v27  ;;  %389 = vmatpush.xpose.msra.mxu1 %v280_v28  ;;  %v277_v27 = vld [vmem:[%s773_s30 + $0x110] sm:$0xff]  ;;  %v278_v28 = vld [vmem:[%s773_s30 + $0x118] sm:$0xff] }
  0x56   : > { %428 = vmatpush.xpose.msra.mxu3 %v288_v46 }
  0x58   : > { %409 = vmatpush.xpose.msra.mxu2 %v281_v49 }
  0x59   : > { %370 = vmatpush.xpose.msra.mxu0 %v273_v31  ;;  %390 = vmatpush.xpose.msra.mxu1 %v274_v32  ;;  %v265_v31 = vld [vmem:[%s773_s30 + $0xb0] sm:$0xff]  ;;  %v266_v32 = vld [vmem:[%s773_s30 + $0xb8] sm:$0xff] }
  0x5a   : > { %429 = vmatpush.xpose.msra.mxu3 %v282_v50 }
  0x5c   : > { %410 = vmatpush.xpose.msra.mxu2 %v275_v53 }
  0x5d   : > { %371 = vmatpush.xpose.msra.mxu0 %v267_v35  ;;  %391 = vmatpush.xpose.msra.mxu1 %v268_v36  ;;  %v253_v35 = vld [vmem:[%s773_s30 + $0x50] sm:$0xff]  ;;  %v254_v36 = vld [vmem:[%s773_s30 + $0x58] sm:$0xff] }
  0x5e   : > { %430 = vmatpush.xpose.msra.mxu3 %v276_v56 }
  0x60   : > { %411 = vmatpush.xpose.msra.mxu2 %v269_v57 }
  0x61   : > { %372 = vmatpush.xpose.msra.mxu0 %v261_v39  ;;  %392 = vmatpush.xpose.msra.mxu1 %v262_v40  ;;  %v352_v39 = vld.sshfl [vmem:[#allocation1 + $0x20] sm:$0xff pattern:$0x73625140]  ;;  %v353_v40 = vld.sshfl [vmem:[#allocation1 + $0x28] sm:$0xff pattern:$0x73625140] }
  0x62   : > { %431 = vmatpush.xpose.msra.mxu3 %v270_v60 }
  0x64   : > { %412 = vmatpush.xpose.msra.mxu2 %v263_v61 }
  0x65   : > { %373 = vmatpush.xpose.msra.mxu0 %v255_v43  ;;  %393 = vmatpush.xpose.msra.mxu1 %v256_v44 }
  0x66   : > { %432 = vmatpush.xpose.msra.mxu3 %v264_v0 }
  0x68   : > { %413 = vmatpush.xpose.msra.mxu2 %v257_v1 }
  0x69   : > { %374 = vmatpush.xpose.msra.mxu0 %v249_v47  ;;  %394 = vmatpush.xpose.msra.mxu1 %v250_v48 }
  0x6a   : > { %433 = vmatpush.xpose.msra.mxu3 %v258_v4 }
  0x6c   : > { %414 = vmatpush.xpose.msra.mxu2 %v251_v5 }
  0x6d   : > { %375 = vmatpush.xpose.msra.mxu0 %v243_v51  ;;  %395 = vmatpush.xpose.msra.mxu1 %v244_v52 }
  0x6e   : > { %434 = vmatpush.xpose.msra.mxu3 %v252_v9 }
  0x70   : > { %415 = vmatpush.xpose.msra.mxu2 %v245_v10  ;;  %376 = vmatmul.f32.vlgmr.msra.gmra.mxu0 %v348_v17 }
  0x71   : > { %440 = vmatpush.xpose.msrb.mxu0 %v337_v54  ;;  %460 = vmatpush.xpose.msrb.mxu1 %v338_v55  ;;  %v614_v54 = vld [vmem:[%s234_s9] ss:$0 sm:$0xff] }
  0x72   : > { %435 = vmatpush.xpose.msra.mxu3 %v246_v13  ;;  %396 = vmatmul.f32.vlgmr.msra.gmra.mxu1 %v349_v20 }
  0x73   : > { %416 = vmatmul.f32.vlgmr.msra.gmra.mxu2 %v350_v16 }
  0x75   : > { %441 = vmatpush.xpose.msrb.mxu0 %v331_v58  ;;  %461 = vmatpush.xpose.msrb.mxu1 %v332_v59  ;;  %v481_v58 = vld [vmem:[#allocation2] sm:$0x3] }
  0x76   : > { %436 = vmatmul.f32.vlgmr.msra.gmra.mxu3 %v351_v18 }
  0x79   : > { %442 = vmatpush.xpose.msrb.mxu0 %v325_v62  ;;  %462 = vmatpush.xpose.msrb.mxu1 %v326_v63 }
  0x7d   : > { %443 = vmatpush.xpose.msrb.mxu0 %v319_v2  ;;  %463 = vmatpush.xpose.msrb.mxu1 %v320_v3 }
  0x81   : > { %444 = vmatpush.xpose.msrb.mxu0 %v313_v6  ;;  %464 = vmatpush.xpose.msrb.mxu1 %v314_v7 }
  0x85   : > { %445 = vmatpush.xpose.msrb.mxu0 %v307_v11  ;;  %465 = vmatpush.xpose.msrb.mxu1 %v308_v12 }
  0x89   : > { %446 = vmatpush.xpose.msrb.mxu0 %v301_v14  ;;  %466 = vmatpush.xpose.msrb.mxu1 %v302_v15 }
  0x8d   : > { %447 = vmatpush.xpose.msrb.mxu0 %v295_v21  ;;  %467 = vmatpush.xpose.msrb.mxu1 %v296_v22 }
  0x91   : > { %448 = vmatpush.xpose.msrb.mxu0 %v289_v23  ;;  %468 = vmatpush.xpose.msrb.mxu1 %v290_v24 }
  0x95   : > { %449 = vmatpush.xpose.msrb.mxu0 %v283_v25  ;;  %469 = vmatpush.xpose.msrb.mxu1 %v284_v26 }
  0x99   : > { %450 = vmatpush.xpose.msrb.mxu0 %v277_v27  ;;  %470 = vmatpush.xpose.msrb.mxu1 %v278_v28 }
  0x9d   : > { %451 = vmatpush.xpose.msrb.mxu0 %v271_v29  ;;  %471 = vmatpush.xpose.msrb.mxu1 %v272_v30 }
  0xa1   : > { %452 = vmatpush.xpose.msrb.mxu0 %v265_v31  ;;  %472 = vmatpush.xpose.msrb.mxu1 %v266_v32 }
  0xa5   : > { %453 = vmatpush.xpose.msrb.mxu0 %v259_v33  ;;  %473 = vmatpush.xpose.msrb.mxu1 %v260_v34 }
  0xa9   : > { %454 = vmatpush.xpose.msrb.mxu0 %v253_v35  ;;  %474 = vmatpush.xpose.msrb.mxu1 %v254_v36 }
  0xad   : > { %455 = vmatpush.xpose.msrb.mxu0 %v247_v37  ;;  %475 = vmatpush.xpose.msrb.mxu1 %v248_v38 }
  0xb0   : > { %456 = vmatmul.f32.vlgmr.msrb.gmra.mxu0 %v352_v39  ;;  %476 = vmatmul.f32.vlgmr.msrb.gmra.mxu1 %v353_v40 }
  0xed   : > { %v377_v42 = vpop.f32.mrf.mxu0 }
  0xee   : > { %v378_v43 = vadd.f32 %v613_v41, %v377_v42 }
  0xef   : > { %v397_v44 = vpop.f32.mrf.mxu1 }
  0xf0   : > { %v398_v45 = vadd.f32 %v397_v44, %v378_v43 }
  0xf6   : > { %v417_v46 = vpop.f32.mrf.mxu2 }
  0xf7   : > { %v418_v47 = vadd.f32 %v417_v46, %v398_v45 }
  0xf9   : > { %v437_v48 = vpop.f32.mrf.mxu3 }
  0xfa   : > { %v438_v49 = vadd.f32 %v437_v48, %v418_v47 }
 0x12d   : > { %v457_v50 = vpop.f32.mrf.mxu0  ;;  %v477_v51 = vpop.f32.mrf.mxu1 }
 0x12e   : > { %v458_v52 = vadd.f32 %v457_v50, %v438_v49 }
 0x130   : > { %v478_v53 = vadd.f32 %v477_v51, %v458_v52 }
 0x132   : > { %v480_v55 = vmax.f32 %v478_v53, 0.0 }
 0x134   : > { %v486_v56 = vmul.f32 %v614_v54, %v480_v55 }
 0x136   : > { %v488_v57 = vsel %vm487_vm1, %v486_v56, 0.0 }
 0x137   : > { %489 = vadd.xlane.f32.xlu0 %v488_v57 }
 0x1a9   : > { %497 = sbr.rel (%p565_p7) target bundleno = 438 (0x1b6), region = 48 }
 0x1aa   : > { %v490_v59 = vpop.xlane.xlu0 %489 }
 0x1ab   : > { %v491_v60 = vadd.f32 %v490_v59, %v481_v58 }
 0x1ad   : > { %493 = vst.msk [vmem:[#allocation2] sm:$0x3] %vm492_vm2, %v491_v60 }
 0x1b4   : > { %v498_v61 = vld [vmem:[#allocation2] sm:$0x3] }
 0x1b5   : > { %499 = vst.msk [vmem:[%s925_s4] sm:$0x3] %vm492_vm2, %v498_v61 }
 0x1b6 PF: > { %p14_p9 = scmp.ge.s32.totalorder %s731_s20, 4   ;;  %s928_s15 = smov %s671_s16 }
 0x1b7   : > { %s929_s16 = smov %s675_s17  ;;  %s930_s17 = smov %s741_s23 }
 0x1b8   : > { %s931_s18 = smov %s731_s20  ;;  %16 = sbr.rel (!%p14_p9) target bundleno = 3 (0x3), region = 87 }
 0x1bd   :  { %511 = vsyncpa [#allocation4], 1 }
 0x1be   :  { %513 = vsyncpa [#allocation4 + $0x1], 1 }

</bundles_post_ra>
